<compile_context>
chip_gen: v7x
topology: tpu7x:2x2x1
jax: 0.10.0
libtpu: 0.0.40
codegen_flags: <defaults>
</compile_context>

<pallas_src>
import jax
import jax.numpy as jnp
from jax.experimental import pallas as pl
from jax.experimental.pallas import tpu as pltpu


def adaptivepool_kernel(x_ref, w_ref, o_ref):
    # x_ref: (B_TILE, N, D) tile; w_ref: (D, 2D) fused [W_att^T | W_v^T]; o_ref: (B_TILE, D)
    bt, n, d = x_ref.shape

    # Single fused projection matmul on the MXU: (B_TILE*N, D) x (D, 2D).
    x2 = x_ref[...].reshape(bt * n, d)
    y = jnp.dot(x2, w_ref[...], preferred_element_type=jnp.float32)   # (bt*n, 2d)
    y = y.reshape(bt, n, 2 * d)
    a = y[:, :, :d]                                   # proj_att output, (bt, n, d)
    v = y[:, :, d:]                                   # proj_v output,   (bt, n, d)

    # Softmax over the sequence axis N (== transpose(1,2) + softmax(dim=-1) in PyTorch),
    # with the normalization folded into the mean-over-N reduction.
    m = jnp.max(a, axis=1, keepdims=True)             # (bt, 1, d)
    e = jnp.exp(a - m)                                # (bt, n, d)
    s = jnp.sum(e, axis=1)                            # (bt, d)   softmax denominator
    ev = jnp.sum(e * v, axis=1)                       # (bt, d)   unnormalized weighted sum
    out = ev * pl.reciprocal(s * float(n), approx=False)   # == mean_n(softmax(a) * v)
    o_ref[...] = out.astype(o_ref.dtype)


def _pick_b_tile(B, N, D):
    # Aim for matmul M = b_tile * N >= 128 (full MXU feed), but never exceed B and keep
    # the double-buffered x tile comfortably inside scoped VMEM (v5e default 16 MiB).
    target = max(1, pl.cdiv(128, N))
    b_tile = min(B, target)
    while b_tile > 1 and 2 * b_tile * N * D * 4 > 8 * 1024 * 1024:
        b_tile //= 2
    return max(1, b_tile)


def adaptivepool_forward(x, w_att, w_v):
    """x: (B, N, D) float32; w_att, w_v: (D, D) PyTorch Linear weights (out, in)."""
    B, N, D = x.shape

    # Fuse the two Linear weights (pre-transposed) into one (D, 2D) RHS.
    w_cat = jnp.concatenate([w_att.T, w_v.T], axis=1)

    b_tile = _pick_b_tile(B, N, D)
    B_pad = pl.cdiv(B, b_tile) * b_tile
    if B_pad != B:
        # Zero-padded batch elements are computed and discarded (softmax of zeros is
        # well-defined, no NaNs).
        x = jnp.pad(x, ((0, B_pad - B), (0, 0), (0, 0)))
    grid = (B_pad // b_tile,)

    # Rough double-buffered footprint: x tile + fused weight + out tile.
    est_bytes = 2 * b_tile * N * D * 4 + 2 * D * (2 * D) * 4 + 2 * b_tile * D * 4
    vmem_limit = None
    if est_bytes > 8 * 1024 * 1024:
        vmem_limit = min(int(est_bytes * 2.5), 60 * 1024 * 1024)

    out_2d = pl.pallas_call(
        adaptivepool_kernel,
        out_shape=jax.ShapeDtypeStruct((B_pad, D), x.dtype),
        grid_spec=pltpu.PrefetchScalarGridSpec(
            num_scalar_prefetch=0,
            grid=grid,
            in_specs=[
                pl.BlockSpec((b_tile, N, D), lambda b: (b, 0, 0)),
                # Grid-invariant fused weight (tiny at D=128, so default buffering is fine).
                # TODO(synk): for large D on v7x (64 MiB VMEM), single-buffer this spec
                # via pipeline_mode=pl.Buffered(1) to free headroom for bigger x tiles.
                pl.BlockSpec((D, 2 * D), lambda b: (0, 0)),
            ],
            out_specs=pl.BlockSpec((b_tile, D), lambda b: (b, 0)),
        ),
        compiler_params=pltpu.CompilerParams(
            dimension_semantics=("parallel",),
            vmem_limit_bytes=vmem_limit,
        ),
    )(x, w_cat)

    return out_2d[:B].reshape(B, D, 1)                # match PyTorch (B, C, 1)


def adaptivepool_reference(x, w_att, w_v):
    a = jnp.einsum("bnd,od->bno", x, w_att)           # proj_att
    v = jnp.einsum("bnd,od->bno", x, w_v)             # proj_v
    a = jnp.swapaxes(a, 1, 2)                         # (B, D, N)
    v = jnp.swapaxes(v, 1, 2)
    p = jax.nn.softmax(a, axis=-1)
    return jnp.mean(p * v, axis=-1, keepdims=True)    # (B, D, 1)


if __name__ == "__main__":
    D = 128                                           # module default dim
    key = jax.random.PRNGKey(0)
    kx, ka, kv, kx2 = jax.random.split(key, 4)

    # Deterministic "Linear(dim, dim, bias=False)" weights, shape (out, in) like PyTorch.
    bound = 1.0 / (D ** 0.5)
    w_att = jax.random.uniform(ka, (D, D), minval=-bound, maxval=bound, dtype=jnp.float32)
    w_v = jax.random.uniform(kv, (D, D), minval=-bound, maxval=bound, dtype=jnp.float32)

    # Small primary test shape.
    B, N = 2, 8
    x = jax.random.normal(kx, (B, N, D), dtype=jnp.float32)
    out = jax.block_until_ready(adaptivepool_forward(x, w_att, w_v))
    ref = adaptivepool_reference(x, w_att, w_v)
    assert out.shape == (B, D, 1), out.shape
    assert jnp.allclose(out, ref, atol=2e-5, rtol=2e-5), "mismatch vs reference (B=2)"

    # Second test: B not a multiple of the batch tile -> exercises padding + multi-step grid.
    B2 = 20
    x2 = jax.random.normal(kx2, (B2, N, D), dtype=jnp.float32)
    out2 = jax.block_until_ready(adaptivepool_forward(x2, w_att, w_v))
    ref2 = adaptivepool_reference(x2, w_att, w_v)
    assert out2.shape == (B2, D, 1), out2.shape
    assert jnp.allclose(out2, ref2, atol=2e-5, rtol=2e-5), "mismatch vs reference (B=20)"

    print("KERNEL_OK")
</pallas_src>

<mosaic_0001>
module attributes {stable_mosaic.version = 11 : i64} {
  func.func @adaptivepool_kernel(%arg0: i32, %arg1: memref<2x8x128xf32, #tpu.memory_space<vmem>>, %arg2: memref<128x256xf32, #tpu.memory_space<vmem>>, %arg3: memref<2x128xf32, #tpu.memory_space<vmem>>) attributes {dimension_semantics = [#tpu.dimension_semantics<parallel>], iteration_bounds = array<i64: 1>, scalar_prefetch = 0 : i64, scratch_operands = 0 : i64, tpu.core_type = #tpu.core_type<tc>, window_params = [{transform_indices = @transform_0, window_bounds = array<i64: 2, 8, 128>}, {pipeline_mode = #tpu.pipeline_mode<synchronous>, transform_indices = @transform_1, window_bounds = array<i64: 128, 256>}, {transform_indices = @transform_2, window_bounds = array<i64: 2, 128>}]} {
    %c0 = arith.constant 0 : index
    %c0_0 = arith.constant 0 : index
    %c0_1 = arith.constant 0 : index
    %0 = vector.load %arg1[%c0, %c0_0, %c0_1] : memref<2x8x128xf32, #tpu.memory_space<vmem>>, vector<2x8x128xf32>
    %1 = vector.shape_cast %0 : vector<2x8x128xf32> to vector<16x128xf32>
    %c0_2 = arith.constant 0 : index
    %c0_3 = arith.constant 0 : index
    %2 = vector.load %arg2[%c0_2, %c0_3] : memref<128x256xf32, #tpu.memory_space<vmem>>, vector<128x256xf32>
    %cst = arith.constant dense<0.000000e+00> : vector<16x256xf32>
    %3 = tpu.matmul %1, %2, %cst {dimension_numbers = #tpu.dot_dimension_numbers<[1], [0], [0], [1], [0, 0, 1, 1], [], []>} : vector<16x128xf32>, vector<128x256xf32>, vector<16x256xf32> -> vector<16x256xf32>
    %4 = vector.shape_cast %3 : vector<16x256xf32> to vector<2x8x256xf32>
    %5 = vector.extract_strided_slice %4 {offsets = [0, 0, 0], sizes = [2, 8, 128], strides = [1, 1, 1]} : vector<2x8x256xf32> to vector<2x8x128xf32>
    %6 = vector.extract_strided_slice %4 {offsets = [0, 0, 128], sizes = [2, 8, 128], strides = [1, 1, 1]} : vector<2x8x256xf32> to vector<2x8x128xf32>
    %cst_4 = arith.constant dense<0xFF800000> : vector<2x128xf32>
    %7 = vector.multi_reduction <maximumf>, %5, %cst_4 [1] : vector<2x8x128xf32> to vector<2x128xf32>
    %8 = vector.shape_cast %7 : vector<2x128xf32> to vector<2x1x128xf32>
    %9 = vector.broadcast %8 : vector<2x1x128xf32> to vector<2x8x128xf32>
    %10 = arith.subf %5, %9 : vector<2x8x128xf32>
    %11 = math.exp %10 : vector<2x8x128xf32>
    %cst_5 = arith.constant dense<0.000000e+00> : vector<2x128xf32>
    %12 = vector.multi_reduction <add>, %11, %cst_5 [1] : vector<2x8x128xf32> to vector<2x128xf32>
    %13 = arith.mulf %11, %6 : vector<2x8x128xf32>
    %cst_6 = arith.constant dense<0.000000e+00> : vector<2x128xf32>
    %14 = vector.multi_reduction <add>, %13, %cst_6 [1] : vector<2x8x128xf32> to vector<2x128xf32>
    %cst_7 = arith.constant 8.000000e+00 : f32
    %15 = vector.broadcast %cst_7 : f32 to vector<2x128xf32>
    %16 = arith.mulf %12, %15 : vector<2x128xf32>
    %17 = tpu.reciprocal %16 : vector<2x128xf32> -> vector<2x128xf32>
    %18 = arith.mulf %14, %17 : vector<2x128xf32>
    %c0_8 = arith.constant 0 : index
    %c0_9 = arith.constant 0 : index
    %19 = vector.load %arg3[%c0_8, %c0_9] : memref<2x128xf32, #tpu.memory_space<vmem>>, vector<2x128xf32>
    tpu.vector_store %arg3[%c0_8, %c0_9], %18 {strides = array<i32>} : memref<2x128xf32, #tpu.memory_space<vmem>>, vector<2x128xf32>,
    return
  }
  func.func @transform_0(%arg0: i32) -> (i32, i32, i32) {
    %c0_i32 = arith.constant 0 : i32
    %c0_i32_0 = arith.constant 0 : i32
    %c0_i32_1 = arith.constant 0 : i32
    return %arg0, %c0_i32, %c0_i32_0 : i32, i32, i32
  }
  func.func @transform_1(%arg0: i32) -> (i32, i32) {
    %c0_i32 = arith.constant 0 : i32
    %c0_i32_0 = arith.constant 0 : i32
    %c0_i32_1 = arith.constant 0 : i32
    return %c0_i32, %c0_i32_0 : i32, i32
  }
  func.func @transform_2(%arg0: i32) -> (i32, i32) {
    %c0_i32 = arith.constant 0 : i32
    %c0_i32_0 = arith.constant 0 : i32
    return %arg0, %c0_i32 : i32, i32
  }
}

</mosaic_0001>

<bundles_post_ra>
// kernel: tpu_custom_call.1
= control target key start
LH: loop header
LB: loop body
LE: loop exit
PB: predicated region body
PF: predicated region fallthrough
CT: control target
= control target key end

     0   :  { %7 = vsyncpa [#allocation3], 0  ;;  %s418_s0 = inlined_call_operand.hbm [shape: f32[2,8,128], index: 0, kind: input, shape index: {}]   ;;  %s419_s1 = inlined_call_operand.hbm [shape: f32[128,256], index: 1, kind: input, shape index: {}]   ;;  %s420_s2 = inlined_call_operand.hbm [shape: f32[2,128], index: 2, kind: output, shape index: {}]  }
   0x1   :  { %8 = vsyncpa [#allocation6], 0 }
   0x2   :  { %9 = vsyncpa [#allocation4], 0  ;;  %s359_s9 = smov [#allocation2]   ;;  %s287_s13 = scalar_lea.hbm %s418_s0, 256 }
   0x3   :  { %s15_s10 = sshll.u32 %s359_s9, 4  ;;  %p288_p0 = scmp.ne.s32.totalorder %s418_s0, %s287_s13  ;;  %s16_s10 = int_to_ptr.vmem [resolvable:$true] %s15_s10 }
   0x4   :  { %p291_p1 = scmp.lt.u32.totalorder %s287_s13, %s418_s0 }
   0x6   :  { %p293_p2 = pnand %p291_p1, %p288_p0 }
   0x8   :  { %296 = shalt.err (!%p293_p2)
}
   0x9   :  { %s297_s18 = scalar_lea.vmem %s16_s10, 256  ;;  %p302_p4 = scmp.lt.s32.totalorder %s16_s10, %s16_s10 }
   0xa   :  { %p298_p3 = scmp.ne.s32.totalorder %s16_s10, %s297_s18  ;;  %p303_p5 = scmp.lt.s32.totalorder %s297_s18, %s297_s18 }
   0xc   :  { %p304_p6 = por %p303_p5, %p302_p4 }
   0xe   :  { %p305_p7 = pnand %p304_p6, %p298_p3 }
  0x10   :  { %308 = shalt.err (!%p305_p7)
}
  0x11   :  { %s360_s19 = smov 128   ;;  %s361_s20 = smov 8  }
  0x12   :  { %21 = dma.hbm_to_vmem [thread:$0]  %s418_s0, 256, %s16_s10, [#allocation3], %s360_s19, %s360_s19, %s361_s20  }
  0x13   :  { %s362_s23 = smov [#allocation5]   ;;  %s309_s27 = scalar_lea.hbm %s419_s1, 4096 }
  0x14   :  { %s27_s24 = sshll.u32 %s362_s23, 4  ;;  %p310_p8 = scmp.ne.s32.totalorder %s419_s1, %s309_s27  ;;  %s28_s24 = int_to_ptr.vmem [resolvable:$true] %s27_s24 }
  0x15   :  { %p313_p9 = scmp.lt.u32.totalorder %s309_s27, %s419_s1 }
  0x17   :  { %p315_p10 = pnand %p313_p9, %p310_p8 }
  0x19   :  { %318 = shalt.err (!%p315_p10)
}
  0x1a   :  { %s319_s4 = scalar_lea.vmem %s28_s24, 4096  ;;  %p324_p12 = scmp.lt.s32.totalorder %s28_s24, %s28_s24 }
  0x1b   :  { %p320_p11 = scmp.ne.s32.totalorder %s28_s24, %s319_s4  ;;  %p325_p13 = scmp.lt.s32.totalorder %s319_s4, %s319_s4 }
  0x1d   :  { %p326_p0 = por %p325_p13, %p324_p12 }
  0x1f   :  { %p327_p1 = pnand %p326_p0, %p320_p11 }
  0x21   :  { %330 = shalt.err (!%p327_p1)
}
  0x22   :  { %s363_s0 = smov 256   ;;  %s364_s5 = smov 16  }
  0x23   :  { %33 = dma.hbm_to_vmem [thread:$0]  %s419_s1, 4096, %s28_s24, [#allocation6], %s363_s0, %s363_s0, %s364_s5  }
  0x24   :  { %353 = dma.done.wait [#allocation3], 256  }
  0x25   :  { %354 = vsyncadd [#allocation3], 4294967040 }
  0x26   :  { %355 = dma.done.wait [#allocation6], 4096  }
  0x27   :  { %356 = vsyncadd [#allocation6], 4294963200  ;;  %v365_v0 = vmov 0.0   ;;  %v43_v1 = vld [vmem:[#allocation5 + $0x8] sm:$0xff]  ;;  %v45_v2 = vld [vmem:[#allocation5 + $0x18] sm:$0xff]  ;;  %s366_s1 = smov [#allocation7]  }
  0x28   :  { %138 = vmatprep.mubr.f32.mxu0 %v365_v0  ;;  %144 = vmatprep.mubr.f32.mxu1 %v365_v0  ;;  %v42_v3 = vld [vmem:[#allocation5] sm:$0xff]  ;;  %v223_v4 = vpack.c.bf16 %v45_v2, %v43_v1  ;;  %v44_v5 = vld [vmem:[#allocation5 + $0x10] sm:$0xff]  ;;  %v47_v6 = vld [vmem:[#allocation5 + $0x28] sm:$0xff]  ;;  %s213_s8 = sshll.u32 %s366_s1, 4  ;;  %vm203_vm0 = vcmask 1041409   ;;  %s214_s8 = int_to_ptr.vmem [resolvable:$true] %s213_s8 }
  0x29   :  { %v49_v7 = vld [vmem:[#allocation5 + $0x38] sm:$0xff]  ;;  %v225_v8 = vpack.c.bf16 %v44_v5, %v42_v3  ;;  %v46_v10 = vld [vmem:[#allocation5 + $0x20] sm:$0xff]  ;;  %v48_v11 = vld [vmem:[#allocation5 + $0x30] sm:$0xff]  ;;  %s331_s9 = scalar_lea.vmem %s214_s8, 32  ;;  %p336_p3 = scmp.lt.s32.totalorder %s214_s8, %s214_s8 }
  0x2a   :  { %v227_v9 = vpack.c.bf16 %v49_v7, %v47_v6  ;;  %v51_v12 = vld [vmem:[#allocation5 + $0x48] sm:$0xff]  ;;  %224 = vmatprep.subr.bf16.mxu0 %v223_v4  ;;  %255 = vmatprep.subr.bf16.mxu1 %v223_v4  ;;  %v53_v13 = vld [vmem:[#allocation5 + $0x58] sm:$0xff]  ;;  %v229_v14 = vpack.c.bf16 %v48_v11, %v46_v10  ;;  %v50_v16 = vld [vmem:[#allocation5 + $0x40] sm:$0xff]  ;;  %p332_p2 = scmp.ne.s32.totalorder %s214_s8, %s331_s9  ;;  %p337_p4 = scmp.lt.s32.totalorder %s331_s9, %s331_s9 }
  0x2b   :  { %226 = vmatpush1.bf16.msra.mxu0 %v225_v8  ;;  %263 = vmatpush1.bf16.msra.mxu1 %v225_v8  ;;  %v231_v15 = vpack.c.bf16 %v53_v13, %v51_v12  ;;  %v52_v17 = vld [vmem:[#allocation5 + $0x50] sm:$0xff]  ;;  %v55_v18 = vld [vmem:[#allocation5 + $0x68] sm:$0xff]  ;;  %v57_v19 = vld [vmem:[#allocation5 + $0x78] sm:$0xff] }
  0x2c   :  { %228 = vmatprep.subr.bf16.mxu0 %v227_v9  ;;  %256 = vmatprep.subr.bf16.mxu1 %v227_v9  ;;  %v233_v20 = vpack.c.bf16 %v52_v17, %v50_v16  ;;  %v235_v21 = vpack.c.bf16 %v57_v19, %v55_v18  ;;  %v54_v22 = vld [vmem:[#allocation5 + $0x60] sm:$0xff]  ;;  %v56_v23 = vld [vmem:[#allocation5 + $0x70] sm:$0xff]  ;;  %v59_v24 = vld [vmem:[#allocation5 + $0x88] sm:$0xff]  ;;  %p338_p5 = por %p337_p4, %p336_p3 }
  0x2d   :  { %v61_v25 = vld [vmem:[#allocation5 + $0x98] sm:$0xff]  ;;  %v237_v26 = vpack.c.bf16 %v56_v23, %v54_v22  ;;  %v58_v28 = vld [vmem:[#allocation5 + $0x80] sm:$0xff]  ;;  %v60_v29 = vld [vmem:[#allocation5 + $0x90] sm:$0xff] }
  0x2e   :  { %v239_v27 = vpack.c.bf16 %v61_v25, %v59_v24  ;;  %v63_v30 = vld [vmem:[#allocation5 + $0xa8] sm:$0xff]  ;;  %v65_v31 = vld [vmem:[#allocation5 + $0xb8] sm:$0xff]  ;;  %v241_v32 = vpack.c.bf16 %v60_v29, %v58_v28  ;;  %v62_v34 = vld [vmem:[#allocation5 + $0xa0] sm:$0xff]  ;;  %p339_p6 = pnand %p338_p5, %p332_p2 }
  0x2f   :  { %230 = vmatpush1.bf16.msra.mxu0 %v229_v14  ;;  %264 = vmatpush1.bf16.msra.mxu1 %v229_v14  ;;  %v243_v33 = vpack.c.bf16 %v65_v31, %v63_v30  ;;  %v64_v35 = vld [vmem:[#allocation5 + $0xb0] sm:$0xff]  ;;  %v67_v36 = vld [vmem:[#allocation5 + $0xc8] sm:$0xff]  ;;  %v69_v37 = vld [vmem:[#allocation5 + $0xd8] sm:$0xff] }
  0x30   :  { %232 = vmatprep.subr.bf16.mxu0 %v231_v15  ;;  %257 = vmatprep.subr.bf16.mxu1 %v231_v15  ;;  %v245_v38 = vpack.c.bf16 %v64_v35, %v62_v34  ;;  %v247_v39 = vpack.c.bf16 %v69_v37, %v67_v36  ;;  %v66_v40 = vld [vmem:[#allocation5 + $0xc0] sm:$0xff]  ;;  %v68_v41 = vld [vmem:[#allocation5 + $0xd0] sm:$0xff]  ;;  %v71_v42 = vld [vmem:[#allocation5 + $0xe8] sm:$0xff] }
  0x31   :  { %v73_v43 = vld [vmem:[#allocation5 + $0xf8] sm:$0xff]  ;;  %v249_v44 = vpack.c.bf16 %v68_v41, %v66_v40  ;;  %v70_v46 = vld [vmem:[#allocation5 + $0xe0] sm:$0xff]  ;;  %v72_v47 = vld [vmem:[#allocation5 + $0xf0] sm:$0xff] }
  0x32   :  { %v251_v45 = vpack.c.bf16 %v73_v43, %v71_v42  ;;  %v253_v48 = vpack.c.bf16 %v72_v47, %v70_v46  ;;  %v40_v49 = vld [vmem:[#allocation2] sm:$0xff]  ;;  %v41_v50 = vld [vmem:[#allocation2 + $0x8] sm:$0xff] }
  0x33   :  { %234 = vmatpush1.bf16.msra.mxu0 %v233_v20  ;;  %265 = vmatpush1.bf16.msra.mxu1 %v233_v20 }
  0x34   :  { %236 = vmatprep.subr.bf16.mxu0 %v235_v21  ;;  %258 = vmatprep.subr.bf16.mxu1 %v235_v21 }
  0x37   :  { %238 = vmatpush1.bf16.msra.mxu0 %v237_v26  ;;  %266 = vmatpush1.bf16.msra.mxu1 %v237_v26 }
  0x38   :  { %240 = vmatprep.subr.bf16.mxu0 %v239_v27  ;;  %259 = vmatprep.subr.bf16.mxu1 %v239_v27 }
  0x3b   :  { %242 = vmatpush1.bf16.msra.mxu0 %v241_v32  ;;  %267 = vmatpush1.bf16.msra.mxu1 %v241_v32 }
  0x3c   :  { %244 = vmatprep.subr.bf16.mxu0 %v243_v33  ;;  %260 = vmatprep.subr.bf16.mxu1 %v243_v33 }
  0x3f   :  { %246 = vmatpush1.bf16.msra.mxu0 %v245_v38  ;;  %268 = vmatpush1.bf16.msra.mxu1 %v245_v38 }
  0x40   :  { %248 = vmatprep.subr.bf16.mxu0 %v247_v39  ;;  %261 = vmatprep.subr.bf16.mxu1 %v247_v39 }
  0x43   :  { %250 = vmatpush1.bf16.msra.mxu0 %v249_v44  ;;  %269 = vmatpush1.bf16.msra.mxu1 %v249_v44 }
  0x44   :  { %252 = vmatprep.subr.bf16.mxu0 %v251_v45  ;;  %262 = vmatprep.subr.bf16.mxu1 %v251_v45 }
  0x47   :  { %254 = vmatpush1.bf16.msra.mxu0 %v253_v48  ;;  %270 = vmatpush1.bf16.msra.mxu1 %v253_v48 }
  0x4a   :  { %139 = vmatmul.mubr.f32.vlgmr.msra.gmra.mrb[0].mxu0 %v40_v49  ;;  %145 = vmatmul.mubr.f32.vlgmr.msra.gmra.mrb[0].mxu1 %v41_v50 }
 0x11d   :  { %v140_v51 = vpop.f32.mrb[0].mxu0  ;;  %v146_v52 = vpop.f32.mrb[0].mxu1 }
 0x11e   :  { %v151_v53 = vrot.slane %v140_v51, 4  ;;  %v157_v54 = vrot.slane %v146_v52, 4  ;;  %v142_v55 = vpop.f32.mrb[1].mxu0  ;;  %v148_v56 = vpop.f32.mrb[1].mxu1 }
 0x120   :  { %v152_v57 = vmax.f32 %v140_v51, %v151_v53  ;;  %v158_v58 = vmax.f32 %v146_v52, %v157_v54 }
 0x122   :  { %v153_v59 = vrot.slane %v152_v57, 2  ;;  %v159_v60 = vrot.slane %v158_v58, 2 }
 0x124   :  { %v154_v61 = vmax.f32 %v152_v57, %v153_v59  ;;  %v160_v62 = vmax.f32 %v158_v58, %v159_v60 }
 0x126   :  { %v155_v63 = vrot.slane %v154_v61, 1  ;;  %v161_v0 = vrot.slane %v160_v62, 1 }
 0x128   :  { %v156_v1 = vmax.f32 %v154_v61, %v155_v63  ;;  %v162_v2 = vmax.f32 %v160_v62, %v161_v0 }
 0x12a   :  { %v163_v3 = vsub.f32 %v140_v51, %v156_v1  ;;  %v164_v4 = vsub.f32 %v146_v52, %v162_v2 }
 0x12c   :  { %v165_v5 = vmul.f32 1.442695, %v163_v3  ;;  %v167_v6 = vmul.f32 1.442695, %v164_v4 }
 0x12e   :  { %279 = vpow2.f32 %v165_v5 }
 0x12f   :  { %281 = vpow2.f32 %v167_v6 }
 0x138   :  { %v280_v7 = vpop.eup %279 }
 0x139   :  { %v282_v8 = vpop.eup %281  ;;  %v181_v9 = vmul.f32 %v280_v7, %v142_v55  ;;  %v169_v10 = vrot.slane %v280_v7, 4 }
 0x13a   :  { %v182_v11 = vmul.f32 %v282_v8, %v148_v56  ;;  %v175_v12 = vrot.slane %v282_v8, 4 }
 0x13b   :  { %v170_v13 = vadd.f32 %v280_v7, %v169_v10  ;;  %v183_v14 = vrot.slane %v181_v9, 4 }
 0x13c   :  { %v176_v15 = vadd.f32 %v282_v8, %v175_v12  ;;  %v189_v16 = vrot.slane %v182_v11, 4 }
 0x13d   :  { %v171_v17 = vrot.slane %v170_v13, 2  ;;  %v184_v20 = vadd.f32 %v183_v14, %v181_v9 }
 0x13e   :  { %v177_v18 = vrot.slane %v176_v15, 2  ;;  %v190_v22 = vadd.f32 %v189_v16, %v182_v11 }
 0x13f   :  { %v172_v19 = vadd.f32 %v171_v17, %v170_v13  ;;  %v185_v26 = vrot.slane %v184_v20, 2 }
 0x140   :  { %v178_v21 = vadd.f32 %v177_v18, %v176_v15  ;;  %v191_v28 = vrot.slane %v190_v22, 2 }
 0x141   :  { %v173_v23 = vrot.slane %v172_v19, 1  ;;  %v186_v31 = vadd.f32 %v185_v26, %v184_v20 }
 0x142   :  { %v179_v24 = vrot.slane %v178_v21, 1  ;;  %v192_v32 = vadd.f32 %v191_v28, %v190_v22 }
 0x143   :  { %v174_v25 = vadd.f32 %v173_v23, %v172_v19  ;;  %v187_v33 = vrot.slane %v186_v31, 1 }
 0x144   :  { %v180_v27 = vadd.f32 %v179_v24, %v178_v21  ;;  %v193_v34 = vrot.slane %v192_v32, 1 }
 0x145   :  { %v195_v29 = vmul.f32 8.0, %v174_v25  ;;  %v188_v35 = vadd.f32 %v187_v33, %v186_v31 }
 0x146   :  { %v196_v30 = vmul.f32 8.0, %v180_v27  ;;  %v194_v37 = vadd.f32 %v193_v34, %v192_v32 }
 0x147   :  { %283 = vrcp.f32 %v195_v29 }
 0x148   :  { %285 = vrcp.f32 %v196_v30 }
 0x151   :  { %v284_v36 = vpop.eup %283 }
 0x152   :  { %v286_v38 = vpop.eup %285  ;;  %v199_v39 = vmul.f32 %v284_v36, %v188_v35 }
 0x153   :  { %v200_v40 = vmul.f32 %v286_v38, %v194_v37 }
 0x155   :  { %v204_v41 = vsel %vm203_vm0, %v200_v40, %v199_v39 }
 0x156   :  { %206 = vst [vmem:[#allocation7] sm:$0x3] %v204_v41 }
 0x157   :  { %342 = shalt.err (!%p339_p6)
}
 0x158   :  { %s343_s12 = scalar_lea.hbm %s420_s2, 32 }
 0x159   :  { %p344_p7 = scmp.ne.s32.totalorder %s420_s2, %s343_s12  ;;  %p347_p8 = scmp.lt.u32.totalorder %s343_s12, %s420_s2 }
 0x15b   :  { %p349_p9 = pnand %p347_p8, %p344_p7 }
 0x15d   :  { %352 = shalt.err (!%p349_p9)
}
 0x15e   :  { %216 = dma.vmem_to_hbm [thread:$0]  %s214_s8, 32, %s420_s2, [#allocation4]  }
 0x15f   :  { %357 = dma.done.wait [#allocation4], 32  }
 0x160   :  { %358 = vsyncadd [#allocation4], 4294967264 }
 0x161   :  { %220 = vsyncpa [#allocation3], 1 }
 0x162   :  { %221 = vsyncpa [#allocation6], 1 }
 0x163   :  { %222 = vsyncpa [#allocation4], 1 }

</bundles_post_ra>
